<compile_context>
chip_gen: v5e
topology: v5e:2x2
jax: 0.10.0
libtpu: 0.0.40
codegen_flags: <defaults>
</compile_context>

<pallas_src>
import math
import functools

import jax
import jax.numpy as jnp
from jax import lax
from jax.experimental import pallas as pl
from jax.experimental.pallas import tpu as pltpu

BN_EPS = 1e-5
LANE = 128


def _round_up(n, m):
    return ((n + m - 1) // m) * m


# ---------------------------------------------------------------------------
# Kernel: one batch tile through the whole (BN-folded) MLP.
# Matmul inputs may be bf16 (MXU fast path); accumulation, bias add and ReLU
# stay f32.
# ---------------------------------------------------------------------------
def _qnet_kernel(x_ref,
                 w1_ref, b1_ref,
                 w2_ref, b2_ref,
                 w3_ref, b3_ref,
                 w4_ref, b4_ref,
                 o_ref):
    cdt = w1_ref.dtype  # MXU input dtype (bf16 or f32)

    h = jnp.dot(x_ref[...].astype(cdt), w1_ref[...],
                preferred_element_type=jnp.float32) + b1_ref[...]
    h = jnp.maximum(h, 0.0)

    h = jnp.dot(h.astype(cdt), w2_ref[...],
                preferred_element_type=jnp.float32) + b2_ref[...]
    h = jnp.maximum(h, 0.0)

    h = jnp.dot(h.astype(cdt), w3_ref[...],
                preferred_element_type=jnp.float32) + b3_ref[...]
    h = jnp.maximum(h, 0.0)

    o_ref[...] = jnp.dot(h.astype(cdt), w4_ref[...],
                         preferred_element_type=jnp.float32) + b4_ref[...]


@functools.partial(jax.jit, static_argnames=("action_dim", "block_batch"))
def enhanced_qnetwork_forward(x, prepared, *, action_dim, block_batch=256):
    """Batch-tiled forward pass.  `prepared` comes from prepare_params()."""
    w1, b1, w2, b2, w3, b3, w4, b4 = prepared
    B, S = x.shape
    out_pad = w4.shape[1]

    # Batch tile: multiple of 8 (sublane), capped at block_batch (MXU M-dim).
    tb = min(block_batch, _round_up(B, 8))
    Bp = _round_up(B, tb)
    if Bp != B:
        x = jnp.pad(x, ((0, Bp - B), (0, 0)))

    const = lambda i: (0, 0)  # weights/biases: same block every step -> resident
    in_specs = [pl.BlockSpec((tb, S), lambda i: (i, 0))] + [
        pl.BlockSpec(p.shape, const) for p in prepared
    ]
    out_specs = pl.BlockSpec((tb, out_pad), lambda i: (i, 0))

    out = pl.pallas_call(
        _qnet_kernel,
        out_shape=jax.ShapeDtypeStruct((Bp, out_pad), jnp.float32),
        grid=(Bp // tb,),
        in_specs=in_specs,
        out_specs=out_specs,
        compiler_params=pltpu.CompilerParams(
            dimension_semantics=("parallel",)),  # shard batch tiles across TCs (v7x)
    )(x, *prepared)

    return out[:B, :action_dim]


# ---------------------------------------------------------------------------
# Parameter preparation: BN folding + lane-dense output padding + bf16 cast.
# ---------------------------------------------------------------------------
def prepare_params(raw_params, action_dim, compute_dtype=jnp.bfloat16):
    """Fold eval-mode BatchNorms into the following Linear layers.

    Module (eval): L1 -> ReLU -> BN1 -> L2 -> ReLU -> BN2 -> L3 -> ReLU -> L4.
    BN(h) = h*s + t, s = g*rsqrt(v+eps), t = beta - m*s.  Since BN output feeds
    a Linear, (h*s + t) @ W + b == h @ (diag(s) @ W) + (t @ W + b), so BN1 folds
    into (W2, b2) and BN2 into (W3, b3).  Fold is done in f32 before any cast.
    """
    (w1, b1, g1, be1, m1, v1,
     w2, b2, g2, be2, m2, v2,
     w3, b3, w4, b4) = [jnp.asarray(p, jnp.float32) for p in raw_params]

    s1 = g1 * lax.rsqrt(v1 + BN_EPS)           # (1, 512)
    t1 = be1 - m1 * s1
    w2f = w2 * s1.reshape(-1, 1)               # scale rows of W2
    b2f = b2 + t1 @ w2

    s2 = g2 * lax.rsqrt(v2 + BN_EPS)           # (1, 256)
    t2 = be2 - m2 * s2
    w3f = w3 * s2.reshape(-1, 1)
    b3f = b3 + t2 @ w3

    # Lane-dense output head: pad action_dim up to a multiple of 128 so the
    # final store is an unmasked full-lane vst; wrapper slices it back.
    out_pad = _round_up(max(action_dim, LANE), LANE)
    w4p = jnp.zeros((w4.shape[0], out_pad), jnp.float32).at[:, :action_dim].set(w4)
    b4p = jnp.zeros((1, out_pad), jnp.float32).at[:, :action_dim].set(b4)

    cast = lambda w: w.astype(compute_dtype)
    # Biases stay f32 (added after f32 accumulation).
    return (cast(w1), b1, cast(w2f), b2f, cast(w3f), b3f, cast(w4p), b4p)


def _pick_block_batch():
    kind = jax.devices()[0].device_kind.lower()
    # v5e MXU is 4x128x128 -> TB=128 fills M; v6e/v7x are 2x256x256 -> TB=256.
    return 128 if "v5" in kind else 256


# ---------------------------------------------------------------------------
# Init + pure-JAX reference (unfused, f32) matching the PyTorch module.
# ---------------------------------------------------------------------------
def _xavier_uniform(key, fan_in, fan_out):
    limit = math.sqrt(6.0 / (fan_in + fan_out))
    return jax.random.uniform(
        key, (fan_in, fan_out), dtype=jnp.float32, minval=-limit, maxval=limit
    )


def init_params(key, state_dim, action_dim, hidden_dims=(512, 256, 128)):
    """xavier_uniform weights, zero biases, BN gamma=1 / beta=0 / mean=0 / var=1."""
    h1, h2, h3 = hidden_dims
    k1, k2, k3, k4 = jax.random.split(key, 4)

    def row(v):
        return v.reshape(1, -1).astype(jnp.float32)

    w1 = _xavier_uniform(k1, state_dim, h1)
    b1 = row(jnp.zeros((h1,)))
    g1, be1 = row(jnp.ones((h1,))), row(jnp.zeros((h1,)))
    m1, v1 = row(jnp.zeros((h1,))), row(jnp.ones((h1,)))

    w2 = _xavier_uniform(k2, h1, h2)
    b2 = row(jnp.zeros((h2,)))
    g2, be2 = row(jnp.ones((h2,))), row(jnp.zeros((h2,)))
    m2, v2 = row(jnp.zeros((h2,))), row(jnp.ones((h2,)))

    w3 = _xavier_uniform(k3, h2, h3)
    b3 = row(jnp.zeros((h3,)))

    w4 = _xavier_uniform(k4, h3, action_dim)
    b4 = row(jnp.zeros((action_dim,)))

    return (w1, b1, g1, be1, m1, v1,
            w2, b2, g2, be2, m2, v2,
            w3, b3,
            w4, b4)


def _reference_forward(x, params):
    (w1, b1, g1, be1, m1, v1,
     w2, b2, g2, be2, m2, v2,
     w3, b3, w4, b4) = params
    h = jnp.maximum(x @ w1 + b1, 0.0)
    h = (h - m1) / jnp.sqrt(v1 + BN_EPS) * g1 + be1
    h = jnp.maximum(h @ w2 + b2, 0.0)
    h = (h - m2) / jnp.sqrt(v2 + BN_EPS) * g2 + be2
    h = jnp.maximum(h @ w3 + b3, 0.0)
    return h @ w4 + b4


if __name__ == "__main__":
    state_dim = 16
    action_dim = 4
    batch = 8

    key = jax.random.PRNGKey(0)
    k_params, k_x = jax.random.split(key)

    raw = init_params(k_params, state_dim, action_dim)
    x = jax.random.normal(k_x, (batch, state_dim), dtype=jnp.float32)
    ref = _reference_forward(x, raw)

    tb = _pick_block_batch()

    # f32 path: tight check against the unfused reference (fold is exact math).
    p_f32 = prepare_params(raw, action_dim, compute_dtype=jnp.float32)
    out_f32 = enhanced_qnetwork_forward(x, p_f32, action_dim=action_dim, block_batch=tb)
    out_f32 = jax.block_until_ready(out_f32)
    assert out_f32.shape == (batch, action_dim)
    assert jnp.allclose(out_f32, ref, atol=1e-4, rtol=1e-4)

    # bf16 MXU path (perf default on v6e/v7x): looser tolerance vs f32 reference.
    p_bf16 = prepare_params(raw, action_dim, compute_dtype=jnp.bfloat16)
    out_bf16 = enhanced_qnetwork_forward(x, p_bf16, action_dim=action_dim, block_batch=tb)
    out_bf16 = jax.block_until_ready(out_bf16)
    assert out_bf16.shape == (batch, action_dim)
    assert jnp.allclose(out_bf16, ref, atol=5e-2, rtol=5e-2)

    # Exercise a multi-tile grid with a ragged batch tail (padded + sliced).
    big_b = 3 * tb + 17
    xb = jax.random.normal(jax.random.PRNGKey(1), (big_b, state_dim), dtype=jnp.float32)
    out_big = enhanced_qnetwork_forward(xb, p_f32, action_dim=action_dim, block_batch=tb)
    out_big = jax.block_until_ready(out_big)
    assert out_big.shape == (big_b, action_dim)
    assert jnp.allclose(out_big, _reference_forward(xb, raw), atol=1e-4, rtol=1e-4)

    print("KERNEL_OK")
</pallas_src>

<mosaic_0001>
module attributes {stable_mosaic.version = 11 : i64} {
  func.func @_qnet_kernel(%arg0: i32, %arg1: memref<8x16xf32, #tpu.memory_space<vmem>>, %arg2: memref<16x512xf32, #tpu.memory_space<vmem>>, %arg3: memref<1x512xf32, #tpu.memory_space<vmem>>, %arg4: memref<512x256xf32, #tpu.memory_space<vmem>>, %arg5: memref<1x256xf32, #tpu.memory_space<vmem>>, %arg6: memref<256x128xf32, #tpu.memory_space<vmem>>, %arg7: memref<1x128xf32, #tpu.memory_space<vmem>>, %arg8: memref<128x128xf32, #tpu.memory_space<vmem>>, %arg9: memref<1x128xf32, #tpu.memory_space<vmem>>, %arg10: memref<8x128xf32, #tpu.memory_space<vmem>>) attributes {dimension_semantics = [#tpu.dimension_semantics<parallel>], iteration_bounds = array<i64: 1>, scalar_prefetch = 0 : i64, scratch_operands = 0 : i64, tpu.core_type = #tpu.core_type<tc>, window_params = [{transform_indices = @transform_0, window_bounds = array<i64: 8, 16>}, {pipeline_mode = #tpu.pipeline_mode<synchronous>, transform_indices = @transform_1, window_bounds = array<i64: 16, 512>}, {pipeline_mode = #tpu.pipeline_mode<synchronous>, transform_indices = @transform_2, window_bounds = array<i64: 1, 512>}, {pipeline_mode = #tpu.pipeline_mode<synchronous>, transform_indices = @transform_3, window_bounds = array<i64: 512, 256>}, {pipeline_mode = #tpu.pipeline_mode<synchronous>, transform_indices = @transform_4, window_bounds = array<i64: 1, 256>}, {pipeline_mode = #tpu.pipeline_mode<synchronous>, transform_indices = @transform_5, window_bounds = array<i64: 256, 128>}, {pipeline_mode = #tpu.pipeline_mode<synchronous>, transform_indices = @transform_6, window_bounds = array<i64: 1, 128>}, {pipeline_mode = #tpu.pipeline_mode<synchronous>, transform_indices = @transform_7, window_bounds = array<i64: 128, 128>}, {pipeline_mode = #tpu.pipeline_mode<synchronous>, transform_indices = @transform_8, window_bounds = array<i64: 1, 128>}, {transform_indices = @transform_9, window_bounds = array<i64: 8, 128>}]} {
    %c0 = arith.constant 0 : index
    %c0_0 = arith.constant 0 : index
    %0 = vector.load %arg1[%c0, %c0_0] : memref<8x16xf32, #tpu.memory_space<vmem>>, vector<8x16xf32>
    %c0_1 = arith.constant 0 : index
    %c0_2 = arith.constant 0 : index
    %1 = vector.load %arg2[%c0_1, %c0_2] : memref<16x512xf32, #tpu.memory_space<vmem>>, vector<16x512xf32>
    %cst = arith.constant dense<0.000000e+00> : vector<8x512xf32>
    %2 = tpu.matmul %0, %1, %cst {dimension_numbers = #tpu.dot_dimension_numbers<[1], [0], [0], [1], [0, 0, 1, 1], [], []>} : vector<8x16xf32>, vector<16x512xf32>, vector<8x512xf32> -> vector<8x512xf32>
    %c0_3 = arith.constant 0 : index
    %c0_4 = arith.constant 0 : index
    %3 = vector.load %arg3[%c0_3, %c0_4] : memref<1x512xf32, #tpu.memory_space<vmem>>, vector<1x512xf32>
    %4 = vector.broadcast %3 : vector<1x512xf32> to vector<8x512xf32>
    %5 = arith.addf %2, %4 : vector<8x512xf32>
    %cst_5 = arith.constant 0.000000e+00 : f32
    %6 = vector.broadcast %cst_5 : f32 to vector<8x512xf32>
    %7 = arith.maximumf %5, %6 : vector<8x512xf32>
    %c0_6 = arith.constant 0 : index
    %c0_7 = arith.constant 0 : index
    %8 = vector.load %arg4[%c0_6, %c0_7] : memref<512x256xf32, #tpu.memory_space<vmem>>, vector<512x256xf32>
    %cst_8 = arith.constant dense<0.000000e+00> : vector<8x256xf32>
    %9 = tpu.matmul %7, %8, %cst_8 {dimension_numbers = #tpu.dot_dimension_numbers<[1], [0], [0], [1], [0, 0, 1, 1], [], []>} : vector<8x512xf32>, vector<512x256xf32>, vector<8x256xf32> -> vector<8x256xf32>
    %c0_9 = arith.constant 0 : index
    %c0_10 = arith.constant 0 : index
    %10 = vector.load %arg5[%c0_9, %c0_10] : memref<1x256xf32, #tpu.memory_space<vmem>>, vector<1x256xf32>
    %11 = vector.broadcast %10 : vector<1x256xf32> to vector<8x256xf32>
    %12 = arith.addf %9, %11 : vector<8x256xf32>
    %cst_11 = arith.constant 0.000000e+00 : f32
    %13 = vector.broadcast %cst_11 : f32 to vector<8x256xf32>
    %14 = arith.maximumf %12, %13 : vector<8x256xf32>
    %c0_12 = arith.constant 0 : index
    %c0_13 = arith.constant 0 : index
    %15 = vector.load %arg6[%c0_12, %c0_13] : memref<256x128xf32, #tpu.memory_space<vmem>>, vector<256x128xf32>
    %cst_14 = arith.constant dense<0.000000e+00> : vector<8x128xf32>
    %16 = tpu.matmul %14, %15, %cst_14 {dimension_numbers = #tpu.dot_dimension_numbers<[1], [0], [0], [1], [0, 0, 1, 1], [], []>} : vector<8x256xf32>, vector<256x128xf32>, vector<8x128xf32> -> vector<8x128xf32>
    %c0_15 = arith.constant 0 : index
    %c0_16 = arith.constant 0 : index
    %17 = vector.load %arg7[%c0_15, %c0_16] : memref<1x128xf32, #tpu.memory_space<vmem>>, vector<1x128xf32>
    %18 = vector.broadcast %17 : vector<1x128xf32> to vector<8x128xf32>
    %19 = arith.addf %16, %18 : vector<8x128xf32>
    %cst_17 = arith.constant 0.000000e+00 : f32
    %20 = vector.broadcast %cst_17 : f32 to vector<8x128xf32>
    %21 = arith.maximumf %19, %20 : vector<8x128xf32>
    %c0_18 = arith.constant 0 : index
    %c0_19 = arith.constant 0 : index
    %22 = vector.load %arg8[%c0_18, %c0_19] : memref<128x128xf32, #tpu.memory_space<vmem>>, vector<128x128xf32>
    %cst_20 = arith.constant dense<0.000000e+00> : vector<8x128xf32>
    %23 = tpu.matmul %21, %22, %cst_20 {dimension_numbers = #tpu.dot_dimension_numbers<[1], [0], [0], [1], [0, 0, 1, 1], [], []>} : vector<8x128xf32>, vector<128x128xf32>, vector<8x128xf32> -> vector<8x128xf32>
    %c0_21 = arith.constant 0 : index
    %c0_22 = arith.constant 0 : index
    %24 = vector.load %arg9[%c0_21, %c0_22] : memref<1x128xf32, #tpu.memory_space<vmem>>, vector<1x128xf32>
    %25 = vector.broadcast %24 : vector<1x128xf32> to vector<8x128xf32>
    %26 = arith.addf %23, %25 : vector<8x128xf32>
    %c0_23 = arith.constant 0 : index
    %c0_24 = arith.constant 0 : index
    %27 = vector.load %arg10[%c0_23, %c0_24] : memref<8x128xf32, #tpu.memory_space<vmem>>, vector<8x128xf32>
    tpu.vector_store %arg10[%c0_23, %c0_24], %26 {strides = array<i32>} : memref<8x128xf32, #tpu.memory_space<vmem>>, vector<8x128xf32>,
    return
  }
  func.func @transform_0(%arg0: i32) -> (i32, i32) {
    %c0_i32 = arith.constant 0 : i32
    %c0_i32_0 = arith.constant 0 : i32
    return %arg0, %c0_i32 : i32, i32
  }
  func.func @transform_1(%arg0: i32) -> (i32, i32) {
    %c0_i32 = arith.constant 0 : i32
    %c0_i32_0 = arith.constant 0 : i32
    %c0_i32_1 = arith.constant 0 : i32
    return %c0_i32, %c0_i32_0 : i32, i32
  }
  func.func @transform_2(%arg0: i32) -> (i32, i32) {
    %c0_i32 = arith.constant 0 : i32
    %c0_i32_0 = arith.constant 0 : i32
    %c0_i32_1 = arith.constant 0 : i32
    return %c0_i32, %c0_i32_0 : i32, i32
  }
  func.func @transform_3(%arg0: i32) -> (i32, i32) {
    %c0_i32 = arith.constant 0 : i32
    %c0_i32_0 = arith.constant 0 : i32
    %c0_i32_1 = arith.constant 0 : i32
    return %c0_i32, %c0_i32_0 : i32, i32
  }
  func.func @transform_4(%arg0: i32) -> (i32, i32) {
    %c0_i32 = arith.constant 0 : i32
    %c0_i32_0 = arith.constant 0 : i32
    %c0_i32_1 = arith.constant 0 : i32
    return %c0_i32, %c0_i32_0 : i32, i32
  }
  func.func @transform_5(%arg0: i32) -> (i32, i32) {
    %c0_i32 = arith.constant 0 : i32
    %c0_i32_0 = arith.constant 0 : i32
    %c0_i32_1 = arith.constant 0 : i32
    return %c0_i32, %c0_i32_0 : i32, i32
  }
  func.func @transform_6(%arg0: i32) -> (i32, i32) {
    %c0_i32 = arith.constant 0 : i32
    %c0_i32_0 = arith.constant 0 : i32
    %c0_i32_1 = arith.constant 0 : i32
    return %c0_i32, %c0_i32_0 : i32, i32
  }
  func.func @transform_7(%arg0: i32) -> (i32, i32) {
    %c0_i32 = arith.constant 0 : i32
    %c0_i32_0 = arith.constant 0 : i32
    %c0_i32_1 = arith.constant 0 : i32
    return %c0_i32, %c0_i32_0 : i32, i32
  }
  func.func @transform_8(%arg0: i32) -> (i32, i32) {
    %c0_i32 = arith.constant 0 : i32
    %c0_i32_0 = arith.constant 0 : i32
    %c0_i32_1 = arith.constant 0 : i32
    return %c0_i32, %c0_i32_0 : i32, i32
  }
  func.func @transform_9(%arg0: i32) -> (i32, i32) {
    %c0_i32 = arith.constant 0 : i32
    %c0_i32_0 = arith.constant 0 : i32
    return %arg0, %c0_i32 : i32, i32
  }
}

</mosaic_0001>

<bundles_post_ra>
// kernel: enhanced_qnetwork_forward.1
= control target key start
LH: loop header
LB: loop body
LE: loop exit
PB: predicated region body
PF: predicated region fallthrough
CT: control target
= control target key end

     0   :  { %14 = vsyncpa [#allocation3], 0  ;;  %s923_s0 = inlined_call_operand.hbm [shape: f32[8,16], index: 0, kind: input, shape index: {}]   ;;  %s924_s1 = inlined_call_operand.hbm [shape: f32[16,512], index: 1, kind: input, shape index: {}]   ;;  %s925_s2 = inlined_call_operand.hbm [shape: f32[1,512], index: 2, kind: input, shape index: {}]   ;;  %s926_s3 = inlined_call_operand.hbm [shape: f32[512,256], index: 3, kind: input, shape index: {}]   ;;  %s927_s4 = inlined_call_operand.vmem [shape: f32[1,256], index: 4, kind: input, shape index: {}]   ;;  %s928_s5 = inlined_call_operand.hbm [shape: f32[256,128], index: 5, kind: input, shape index: {}]   ;;  %s929_s6 = inlined_call_operand.vmem [shape: f32[1,128], index: 6, kind: input, shape index: {}]   ;;  %s930_s7 = inlined_call_operand.hbm [shape: f32[128,128], index: 7, kind: input, shape index: {}]   ;;  %s931_s8 = inlined_call_operand.vmem [shape: f32[1,128], index: 8, kind: input, shape index: {}]   ;;  %s932_s9 = inlined_call_operand.vmem [shape: f32[8,128], index: 9, kind: output, shape index: {}]  }
   0x1   :  { %15 = vsyncpa [#allocation5], 0 }
   0x2   :  { %16 = vsyncpa [#allocation8], 0  ;;  %s33_s11 = sshll.u32 %s924_s1, 4  ;;  %s34_s11 = int_to_ptr.hbm [resolvable:$true] %s33_s11 }
   0x3   :  { %17 = vsyncpa [#allocation11], 0  ;;  %s821_s12 = smov [#allocation4]   ;;  %s57_s16 = sshll.u32 %s926_s3, 4  ;;  %s58_s16 = int_to_ptr.hbm [resolvable:$true] %s57_s16 }
   0x4   :  { %s35_s13 = sshll.u32 %s821_s12, 4  ;;  %s822_s17 = smov 512   ;;  %s36_s13 = int_to_ptr.vmem [resolvable:$true] %s35_s13 }
   0x5   :  { %s823_s18 = smov 32   ;;  %s824_s19 = smov [#allocation7]  }
   0x6   :  { %41 = dma.hbm_to_vmem [thread:$0]  %s34_s11, 1024, %s36_s13, [#allocation5], %s822_s17, %s822_s17, %s823_s18  }
   0x7   :  { %s59_s20 = sshll.u32 %s824_s19, 4  ;;  %s825_s21 = smov 256   ;;  %s60_s20 = int_to_ptr.vmem [resolvable:$true] %s59_s20 }
   0x8   :  { %s826_s22 = smov 16   ;;  %s23_s24 = sshll.u32 %s923_s0, 4  ;;  %s24_s24 = int_to_ptr.hbm [resolvable:$true] %s23_s24 }
   0x9   :  { %65 = dma.hbm_to_vmem [thread:$0]  %s58_s16, 16384, %s60_s20, [#allocation8], %s825_s21, %s825_s21, %s826_s22  }
   0xa   :  { %s827_s25 = smov [#allocation2]   ;;  %s47_s28 = sshll.u32 %s925_s2, 4  ;;  %s48_s28 = int_to_ptr.hbm [resolvable:$true] %s47_s28 }
   0xb   :  { %s25_s26 = sshll.u32 %s827_s25, 4  ;;  %s828_s29 = smov [#allocation6]   ;;  %s26_s26 = int_to_ptr.vmem [resolvable:$true] %s25_s26 }
   0xc   :  { %28 = dma.hbm_to_vmem [thread:$0]  %s24_s24, 128, %s26_s26, [#allocation3]  }
   0xd   :  { %s49_s30 = sshll.u32 %s828_s29, 4  ;;  %s72_s12 = sshll.u32 %s928_s5, 4  ;;  %s50_s30 = int_to_ptr.vmem [resolvable:$true] %s49_s30  ;;  %s73_s12 = int_to_ptr.hbm [resolvable:$true] %s72_s12 }
   0xe   :  { %52 = dma.hbm_to_vmem [thread:$0]  %s48_s28, 64, %s50_s30, [#allocation5]  }
   0xf   :  { %s829_s0 = smov [#allocation9]   ;;  %s87_s16 = sshll.u32 %s930_s7, 4  ;;  %s88_s16 = int_to_ptr.hbm [resolvable:$true] %s87_s16 }
  0x10   :  { %s74_s13 = sshll.u32 %s829_s0, 4  ;;  %s830_s17 = smov 128   ;;  %s75_s13 = int_to_ptr.vmem [resolvable:$true] %s74_s13 }
  0x11   :  { %s831_s2 = smov 8   ;;  %s832_s18 = smov [#allocation10]  }
  0x12   :  { %80 = dma.hbm_to_vmem [thread:$0]  %s73_s12, 4096, %s75_s13, [#allocation8], %s830_s17, %s830_s17, %s831_s2  }
  0x13   :  { %s89_s19 = sshll.u32 %s832_s18, 4  ;;  %s90_s19 = int_to_ptr.vmem [resolvable:$true] %s89_s19 }
  0x14   :  { %95 = dma.hbm_to_vmem [thread:$0]  %s88_s16, 2048, %s90_s19, [#allocation11], %s830_s17, %s830_s17, %s831_s2  }
  0x15   :  { %813 = dma.done.wait [#allocation3], 128  }
  0x16   :  { %814 = vsyncadd [#allocation3], 4294967168 }
  0x17   :  { %815 = dma.done.wait [#allocation5], 1088  }
  0x18   :  { %816 = vsyncadd [#allocation5], 4294966208 }
  0x19   :  { %817 = dma.done.wait [#allocation8], 20480  }
  0x1a   :  { %818 = vsyncadd [#allocation8], 4294946816 }
  0x1b   :  { %819 = dma.done.wait [#allocation11], 2048  }
  0x1c   :  { %820 = vsyncadd [#allocation11], 4294965248  ;;  %v127_v0 = vld [vmem:[#allocation4 + $0x20] sm:$0xff]  ;;  %v901_v2 = vld [vmem:[#allocation2] sm:$0xff]  ;;  %vm141_vm0 = vcmask 130048  }
  0x1d   :  { %v123_v1 = vld [vmem:[#allocation4] sm:$0xff]  ;;  %159 = vmatpush.msra.mxu3 %v127_v0  ;;  %v128_v3 = vld [vmem:[#allocation4 + $0x28] sm:$0xff]  ;;  %v259_v4 = vld [vmem:[#allocation7 + $0xf0] sm:$0xff] }
  0x1e   :  { %v257_v5 = vld [vmem:[#allocation7 + $0xe0] sm:$0xff]  ;;  %363 = vmatpush.msra.mxu0 %v259_v4  ;;  %v291_v7 = vld [vmem:[#allocation7 + $0x1f0] sm:$0xff]  ;;  %v260_v58 = vld [vmem:[#allocation7 + $0xf8] sm:$0xff] }
  0x1f   :  { %160 = vmatpush.msra.mxu3 %v123_v1  ;;  %v124_v6 = vld [vmem:[#allocation4 + $0x8] sm:$0xff]  ;;  %v129_v8 = vld [vmem:[#allocation4 + $0x30] sm:$0xff]  ;;  %383 = vmatpush.msra.mxu1 %v291_v7  ;;  %v130_v18 = vld [vmem:[#allocation4 + $0x38] sm:$0xff] }
  0x20   :  { %651 = vmatmul.msk.f32.vlgmr.msra.gmra.mxu3 %vm141_vm0, %v901_v2  ;;  %v255_v9 = vld [vmem:[#allocation7 + $0xd0] sm:$0xff]  ;;  %v289_v10 = vld [vmem:[#allocation7 + $0x1e0] sm:$0xff]  ;;  %364 = vmatpush.msra.mxu0 %v257_v5  ;;  %v258_v62 = vld [vmem:[#allocation7 + $0xe8] sm:$0xff] }
  0x21   :  { %179 = vmatpush.msrb.mxu3 %v128_v3  ;;  %v287_v11 = vld [vmem:[#allocation7 + $0x1d0] sm:$0xff]  ;;  %v253_v13 = vld [vmem:[#allocation7 + $0xc0] sm:$0xff]  ;;  %384 = vmatpush.msra.mxu1 %v289_v10  ;;  %v292_v63 = vld [vmem:[#allocation7 + $0x1f8] sm:$0xff] }
  0x22   :  { %v125_v12 = vld [vmem:[#allocation4 + $0x10] sm:$0xff]  ;;  %365 = vmatpush.msra.mxu0 %v255_v9  ;;  %v285_v15 = vld [vmem:[#allocation7 + $0x1c0] sm:$0xff]  ;;  %v126_v22 = vld [vmem:[#allocation4 + $0x18] sm:$0xff] }
  0x23   :  { %180 = vmatpush.msrb.mxu3 %v124_v6  ;;  %v323_v14 = vld [vmem:[#allocation7 + $0x2f0] sm:$0xff]  ;;  %v321_v16 = vld [vmem:[#allocation7 + $0x2e0] sm:$0xff]  ;;  %385 = vmatpush.msra.mxu1 %v287_v11  ;;  %v290_v3 = vld [vmem:[#allocation7 + $0x1e8] sm:$0xff] }
  0x24   :  { %v251_v17 = vld [vmem:[#allocation7 + $0xb0] sm:$0xff]  ;;  %403 = vmatpush.msra.mxu2 %v323_v14  ;;  %366 = vmatpush.msra.mxu0 %v253_v13  ;;  %v249_v20 = vld [vmem:[#allocation7 + $0xa0] sm:$0xff]  ;;  %v254_v6 = vld [vmem:[#allocation7 + $0xc8] sm:$0xff] }
  0x25   :  { %199 = vmatpush.msra.mxu3 %v129_v8  ;;  %v283_v19 = vld [vmem:[#allocation7 + $0x1b0] sm:$0xff]  ;;  %386 = vmatpush.msra.mxu1 %v285_v15  ;;  %v281_v23 = vld [vmem:[#allocation7 + $0x1a0] sm:$0xff]  ;;  %v288_v7 = vld [vmem:[#allocation7 + $0x1d8] sm:$0xff] }
  0x26   :  { %404 = vmatpush.msra.mxu2 %v321_v16  ;;  %v319_v21 = vld [vmem:[#allocation7 + $0x2d0] sm:$0xff]  ;;  %367 = vmatpush.msra.mxu0 %v251_v17  ;;  %v317_v25 = vld [vmem:[#allocation7 + $0x2c0] sm:$0xff]  ;;  %v252_v10 = vld [vmem:[#allocation7 + $0xb8] sm:$0xff] }
  0x27   :  { %200 = vmatpush.msra.mxu3 %v125_v12  ;;  %v247_v24 = vld [vmem:[#allocation7 + $0x90] sm:$0xff]  ;;  %387 = vmatpush.msra.mxu1 %v283_v19  ;;  %v245_v27 = vld [vmem:[#allocation7 + $0x80] sm:$0xff]  ;;  %v286_v11 = vld [vmem:[#allocation7 + $0x1c8] sm:$0xff] }
  0x28   :  { %652 = vmatmul.msk.f32.vlgmr.msrb.gmra.mxu3 %vm141_vm0, %v901_v2  ;;  %368 = vmatpush.msra.mxu0 %v249_v20  ;;  %v279_v26 = vld [vmem:[#allocation7 + $0x190] sm:$0xff]  ;;  %v277_v29 = vld [vmem:[#allocation7 + $0x180] sm:$0xff]  ;;  %v250_v14 = vld [vmem:[#allocation7 + $0xa8] sm:$0xff] }
  0x29   :  { %219 = vmatpush.msrb.mxu3 %v130_v18  ;;  %405 = vmatpush.msra.mxu2 %v319_v21  ;;  %v315_v28 = vld [vmem:[#allocation7 + $0x2b0] sm:$0xff]  ;;  %v241_v33 = vld [vmem:[#allocation7 + $0x60] sm:$0xff]  ;;  %v284_v15 = vld [vmem:[#allocation7 + $0x1b8] sm:$0xff] }
  0x2a   :  { %388 = vmatpush.msra.mxu1 %v281_v23  ;;  %369 = vmatpush.msra.mxu0 %v247_v24  ;;  %v243_v30 = vld [vmem:[#allocation7 + $0x70] sm:$0xff]  ;;  %v313_v34 = vld [vmem:[#allocation7 + $0x2a0] sm:$0xff]  ;;  %v324_v16 = vld [vmem:[#allocation7 + $0x2f8] sm:$0xff] }
  0x2b   :  { %220 = vmatpush.msrb.mxu3 %v126_v22  ;;  %406 = vmatpush.msra.mxu2 %v317_v25  ;;  %v275_v31 = vld [vmem:[#allocation7 + $0x170] sm:$0xff]  ;;  %v273_v35 = vld [vmem:[#allocation7 + $0x160] sm:$0xff]  ;;  %v248_v18 = vld [vmem:[#allocation7 + $0x98] sm:$0xff] }
  0x2c   :  { %389 = vmatpush.msra.mxu1 %v279_v26  ;;  %370 = vmatpush.msra.mxu0 %v245_v27  ;;  %v355_v32 = vld [vmem:[#allocation7 + $0x3f0] sm:$0xff]  ;;  %v353_v36 = vld [vmem:[#allocation7 + $0x3e0] sm:$0xff]  ;;  %v246_v19 = vld [vmem:[#allocation7 + $0x88] sm:$0xff] }
  0x2d   :  { %407 = vmatpush.msra.mxu2 %v315_v28  ;;  %v239_v37 = vld [vmem:[#allocation7 + $0x50] sm:$0xff]  ;;  %v237_v41 = vld [vmem:[#allocation7 + $0x40] sm:$0xff]  ;;  %v244_v20 = vld [vmem:[#allocation7 + $0x78] sm:$0xff] }
  0x2e   :  { %390 = vmatpush.msra.mxu1 %v277_v29  ;;  %371 = vmatpush.msra.mxu0 %v243_v30  ;;  %v311_v38 = vld [vmem:[#allocation7 + $0x290] sm:$0xff]  ;;  %v309_v42 = vld [vmem:[#allocation7 + $0x280] sm:$0xff]  ;;  %v242_v21 = vld [vmem:[#allocation7 + $0x68] sm:$0xff] }
  0x2f   :  { %408 = vmatpush.msra.mxu2 %v313_v34  ;;  %v271_v39 = vld [vmem:[#allocation7 + $0x150] sm:$0xff]  ;;  %v269_v43 = vld [vmem:[#allocation7 + $0x140] sm:$0xff]  ;;  %v282_v22 = vld [vmem:[#allocation7 + $0x1a8] sm:$0xff] }
  0x30   :  { %653 = vmatmul.msk.f32.vlgmr.msra.gmra.mxu3 %vm141_vm0, %v901_v2  ;;  %391 = vmatpush.msra.mxu1 %v275_v31  ;;  %v351_v40 = vld [vmem:[#allocation7 + $0x3d0] sm:$0xff]  ;;  %v349_v44 = vld [vmem:[#allocation7 + $0x3c0] sm:$0xff]  ;;  %v322_v23 = vld [vmem:[#allocation7 + $0x2e8] sm:$0xff] }
  0x31   :  { %423 = vmatpush.msra.mxu3 %v355_v32  ;;  %372 = vmatpush.msra.mxu0 %v241_v33  ;;  %v235_v45 = vld [vmem:[#allocation7 + $0x30] sm:$0xff]  ;;  %v233_v48 = vld [vmem:[#allocation7 + $0x20] sm:$0xff]  ;;  %v240_v25 = vld [vmem:[#allocation7 + $0x58] sm:$0xff] }
  0x32   :  { %392 = vmatpush.msra.mxu1 %v273_v35  ;;  %409 = vmatpush.msra.mxu2 %v311_v38  ;;  %v267_v46 = vld [vmem:[#allocation7 + $0x130] sm:$0xff]  ;;  %v265_v50 = vld [vmem:[#allocation7 + $0x120] sm:$0xff]  ;;  %v280_v26 = vld [vmem:[#allocation7 + $0x198] sm:$0xff] }
  0x33   :  { %424 = vmatpush.msra.mxu3 %v353_v36  ;;  %373 = vmatpush.msra.mxu0 %v239_v37  ;;  %v307_v47 = vld [vmem:[#allocation7 + $0x270] sm:$0xff]  ;;  %v305_v51 = vld [vmem:[#allocation7 + $0x260] sm:$0xff]  ;;  %v320_v27 = vld [vmem:[#allocation7 + $0x2d8] sm:$0xff] }
  0x34   :  { %393 = vmatpush.msra.mxu1 %v271_v39  ;;  %410 = vmatpush.msra.mxu2 %v309_v42  ;;  %v347_v49 = vld [vmem:[#allocation7 + $0x3b0] sm:$0xff]  ;;  %v345_v53 = vld [vmem:[#allocation7 + $0x3a0] sm:$0xff]  ;;  %v238_v29 = vld [vmem:[#allocation7 + $0x48] sm:$0xff] }
  0x35   :  { %425 = vmatpush.msra.mxu3 %v351_v40  ;;  %374 = vmatpush.msra.mxu0 %v237_v41  ;;  %v231_v52 = vld [vmem:[#allocation7 + $0x10] sm:$0xff]  ;;  %v229_v56 = vld [vmem:[#allocation7] sm:$0xff]  ;;  %v278_v30 = vld [vmem:[#allocation7 + $0x188] sm:$0xff] }
  0x36   :  { %394 = vmatpush.msra.mxu1 %v269_v43  ;;  %411 = vmatpush.msra.mxu2 %v307_v47  ;;  %v263_v54 = vld [vmem:[#allocation7 + $0x110] sm:$0xff]  ;;  %v261_v59 = vld [vmem:[#allocation7 + $0x100] sm:$0xff]  ;;  %v318_v31 = vld [vmem:[#allocation7 + $0x2c8] sm:$0xff] }
  0x37   :  { %426 = vmatpush.msra.mxu3 %v349_v44  ;;  %375 = vmatpush.msra.mxu0 %v235_v45  ;;  %v303_v55 = vld [vmem:[#allocation7 + $0x250] sm:$0xff]  ;;  %v301_v60 = vld [vmem:[#allocation7 + $0x240] sm:$0xff]  ;;  %v236_v33 = vld [vmem:[#allocation7 + $0x38] sm:$0xff] }
  0x38   :  { %654 = vmatmul.msk.f32.vlgmr.msrb.gmra.mxu3 %vm141_vm0, %v901_v2  ;;  %395 = vmatpush.msra.mxu1 %v267_v46  ;;  %v343_v57 = vld [vmem:[#allocation7 + $0x390] sm:$0xff]  ;;  %v341_v61 = vld [vmem:[#allocation7 + $0x380] sm:$0xff]  ;;  %v256_v2 = vld [vmem:[#allocation7 + $0xd8] sm:$0xff] }
  0x39   :  { %376 = vmatpush.msra.mxu0 %v233_v48  ;;  %427 = vmatpush.msra.mxu3 %v347_v49  ;;  %v299_v0 = vld [vmem:[#allocation7 + $0x230] sm:$0xff]  ;;  %v297_v4 = vld [vmem:[#allocation7 + $0x220] sm:$0xff]  ;;  %v276_v34 = vld [vmem:[#allocation7 + $0x178] sm:$0xff] }
  0x3a   :  { %396 = vmatpush.msra.mxu1 %v265_v50  ;;  %412 = vmatpush.msra.mxu2 %v305_v51  ;;  %v339_v1 = vld [vmem:[#allocation7 + $0x370] sm:$0xff]  ;;  %v337_v5 = vld [vmem:[#allocation7 + $0x360] sm:$0xff]  ;;  %v316_v35 = vld [vmem:[#allocation7 + $0x2b8] sm:$0xff] }
  0x3b   :  { %377 = vmatpush.msra.mxu0 %v231_v52  ;;  %428 = vmatpush.msra.mxu3 %v345_v53  ;;  %v295_v8 = vld [vmem:[#allocation7 + $0x210] sm:$0xff]  ;;  %v293_v12 = vld [vmem:[#allocation7 + $0x200] sm:$0xff]  ;;  %v356_v36 = vld [vmem:[#allocation7 + $0x3f8] sm:$0xff] }
  0x3c   :  { %397 = vmatpush.msra.mxu1 %v263_v54  ;;  %413 = vmatpush.msra.mxu2 %v303_v55  ;;  %v335_v9 = vld [vmem:[#allocation7 + $0x350] sm:$0xff]  ;;  %v333_v13 = vld [vmem:[#allocation7 + $0x340] sm:$0xff]  ;;  %v234_v37 = vld [vmem:[#allocation7 + $0x28] sm:$0xff] }
  0x3d   :  { %378 = vmatpush.msra.mxu0 %v229_v56  ;;  %429 = vmatpush.msra.mxu3 %v343_v57  ;;  %v331_v17 = vld [vmem:[#allocation7 + $0x330] sm:$0xff]  ;;  %v329_v24 = vld [vmem:[#allocation7 + $0x320] sm:$0xff]  ;;  %v274_v38 = vld [vmem:[#allocation7 + $0x168] sm:$0xff] }
  0x3e   :  { %398 = vmatpush.msra.mxu1 %v261_v59  ;;  %414 = vmatpush.msra.mxu2 %v301_v60  ;;  %v327_v28 = vld [vmem:[#allocation7 + $0x310] sm:$0xff]  ;;  %v325_v32 = vld [vmem:[#allocation7 + $0x300] sm:$0xff]  ;;  %v314_v39 = vld [vmem:[#allocation7 + $0x2a8] sm:$0xff] }
  0x3f   :  { %443 = vmatpush.msrb.mxu0 %v260_v58  ;;  %430 = vmatpush.msra.mxu3 %v341_v61  ;;  %v354_v40 = vld [vmem:[#allocation7 + $0x3e8] sm:$0xff]  ;;  %v232_v41 = vld [vmem:[#allocation7 + $0x18] sm:$0xff] }
  0x40   :  { %463 = vmatpush.msrb.mxu1 %v292_v63  ;;  %415 = vmatpush.msra.mxu2 %v299_v0  ;;  %v272_v42 = vld [vmem:[#allocation7 + $0x158] sm:$0xff]  ;;  %v230_v45 = vld [vmem:[#allocation7 + $0x8] sm:$0xff] }
  0x41   :  { %444 = vmatpush.msrb.mxu0 %v258_v62  ;;  %431 = vmatpush.msra.mxu3 %v339_v1  ;;  %v312_v43 = vld [vmem:[#allocation7 + $0x298] sm:$0xff]  ;;  %v270_v46 = vld [vmem:[#allocation7 + $0x148] sm:$0xff] }
  0x42   :  { %464 = vmatpush.msrb.mxu1 %v290_v3  ;;  %416 = vmatpush.msra.mxu2 %v297_v4  ;;  %v352_v44 = vld [vmem:[#allocation7 + $0x3d8] sm:$0xff]  ;;  %v310_v47 = vld [vmem:[#allocation7 + $0x288] sm:$0xff] }
  0x43   :  { %445 = vmatpush.msrb.mxu0 %v256_v2  ;;  %432 = vmatpush.msra.mxu3 %v337_v5  ;;  %v350_v48 = vld [vmem:[#allocation7 + $0x3c8] sm:$0xff]  ;;  %v268_v49 = vld [vmem:[#allocation7 + $0x138] sm:$0xff] }
  0x44   :  { %465 = vmatpush.msrb.mxu1 %v288_v7  ;;  %417 = vmatpush.msra.mxu2 %v295_v8  ;;  %v308_v50 = vld [vmem:[#allocation7 + $0x278] sm:$0xff]  ;;  %v266_v52 = vld [vmem:[#allocation7 + $0x128] sm:$0xff] }
  0x45   :  { %446 = vmatpush.msrb.mxu0 %v254_v6  ;;  %433 = vmatpush.msra.mxu3 %v335_v9  ;;  %v348_v51 = vld [vmem:[#allocation7 + $0x3b8] sm:$0xff]  ;;  %v306_v53 = vld [vmem:[#allocation7 + $0x268] sm:$0xff] }
  0x46   :  { %466 = vmatpush.msrb.mxu1 %v286_v11  ;;  %418 = vmatpush.msra.mxu2 %v293_v12  ;;  %v346_v54 = vld [vmem:[#allocation7 + $0x3a8] sm:$0xff]  ;;  %v264_v55 = vld [vmem:[#allocation7 + $0x118] sm:$0xff] }
  0x47   :  { %447 = vmatpush.msrb.mxu0 %v252_v10  ;;  %434 = vmatpush.msra.mxu3 %v333_v13  ;;  %v304_v56 = vld [vmem:[#allocation7 + $0x258] sm:$0xff]  ;;  %v262_v58 = vld [vmem:[#allocation7 + $0x108] sm:$0xff] }
  0x48   :  { %467 = vmatpush.msrb.mxu1 %v284_v15  ;;  %483 = vmatpush.msrb.mxu2 %v324_v16  ;;  %v344_v57 = vld [vmem:[#allocation7 + $0x398] sm:$0xff]  ;;  %v302_v59 = vld [vmem:[#allocation7 + $0x248] sm:$0xff] }
  0x49   :  { %448 = vmatpush.msrb.mxu0 %v250_v14  ;;  %435 = vmatpush.msra.mxu3 %v331_v17  ;;  %v342_v60 = vld [vmem:[#allocation7 + $0x388] sm:$0xff]  ;;  %v300_v61 = vld [vmem:[#allocation7 + $0x238] sm:$0xff] }
  0x4a   :  { %468 = vmatpush.msrb.mxu1 %v282_v22  ;;  %484 = vmatpush.msrb.mxu2 %v322_v23  ;;  %v340_v62 = vld [vmem:[#allocation7 + $0x378] sm:$0xff]  ;;  %v298_v63 = vld [vmem:[#allocation7 + $0x228] sm:$0xff] }
  0x4b   :  { %449 = vmatpush.msrb.mxu0 %v248_v18  ;;  %436 = vmatpush.msra.mxu3 %v329_v24  ;;  %v338_v0 = vld [vmem:[#allocation7 + $0x368] sm:$0xff]  ;;  %v296_v1 = vld [vmem:[#allocation7 + $0x218] sm:$0xff] }
  0x4c   :  { %469 = vmatpush.msrb.mxu1 %v280_v26  ;;  %485 = vmatpush.msrb.mxu2 %v320_v27  ;;  %v336_v2 = vld [vmem:[#allocation7 + $0x358] sm:$0xff]  ;;  %v294_v4 = vld [vmem:[#allocation7 + $0x208] sm:$0xff]  ;;  %v539_v27 = vld [vmem:[#allocation9 + $0x70] sm:$0xff] }
  0x4d   :  { %450 = vmatpush.msrb.mxu0 %v246_v19  ;;  %437 = vmatpush.msra.mxu3 %v327_v28  ;;  %v131_v3 = vld [vmem:[#allocation6] sm:$0xf]  ;;  %v334_v5 = vld [vmem:[#allocation7 + $0x348] sm:$0xff] }
  0x4e   :  { %470 = vmatpush.msrb.mxu1 %v278_v30  ;;  %486 = vmatpush.msrb.mxu2 %v318_v31  ;;  %v133_v6 = vperm.slane %v131_v3, 0  ;;  %v332_v7 = vld [vmem:[#allocation7 + $0x338] sm:$0xff]  ;;  %v330_v8 = vld [vmem:[#allocation7 + $0x328] sm:$0xff]  ;;  %v134_v14 = vperm.slane %v131_v3, 1  ;;  %v135_v18 = vperm.slane %v131_v3, 2  ;;  %v136_v22 = vperm.slane %v131_v3, 3 }
  0x4f   :  { %451 = vmatpush.msrb.mxu0 %v244_v20  ;;  %438 = vmatpush.msra.mxu3 %v325_v32  ;;  %v328_v10 = vld [vmem:[#allocation7 + $0x318] sm:$0xff]  ;;  %v326_v12 = vld [vmem:[#allocation7 + $0x308] sm:$0xff]  ;;  %v555_v32 = vld [vmem:[#allocation9 + $0xf0] sm:$0xff] }
  0x50   :  { %471 = vmatpush.msrb.mxu1 %v276_v34  ;;  %487 = vmatpush.msrb.mxu2 %v316_v35  ;;  %v540_v26 = vld [vmem:[#allocation9 + $0x78] sm:$0xff]  ;;  %v538_v28 = vld [vmem:[#allocation9 + $0x68] sm:$0xff] }
  0x51   :  { %452 = vmatpush.msrb.mxu0 %v242_v21  ;;  %503 = vmatpush.msrb.mxu3 %v356_v36  ;;  %v536_v30 = vld [vmem:[#allocation9 + $0x58] sm:$0xff]  ;;  %v534_v34 = vld [vmem:[#allocation9 + $0x48] sm:$0xff]  ;;  %v533_v36 = vld [vmem:[#allocation9 + $0x40] sm:$0xff] }
  0x52   :  { %472 = vmatpush.msrb.mxu1 %v274_v38  ;;  %488 = vmatpush.msrb.mxu2 %v314_v39  ;;  %v556_v31 = vld [vmem:[#allocation9 + $0xf8] sm:$0xff]  ;;  %v554_v35 = vld [vmem:[#allocation9 + $0xe8] sm:$0xff] }
  0x53   :  { %453 = vmatpush.msrb.mxu0 %v240_v25  ;;  %504 = vmatpush.msrb.mxu3 %v354_v40  ;;  %v532_v38 = vld [vmem:[#allocation9 + $0x38] sm:$0xff]  ;;  %v531_v40 = vld [vmem:[#allocation9 + $0x30] sm:$0xff]  ;;  %v611_v3 = vld [vmem:[#allocation10 + $0x48] sm:$0xff] }
  0x54   :  { %473 = vmatpush.msrb.mxu1 %v272_v42  ;;  %489 = vmatpush.msrb.mxu2 %v312_v43  ;;  %v552_v39 = vld [vmem:[#allocation9 + $0xd8] sm:$0xff]  ;;  %v530_v42 = vld [vmem:[#allocation9 + $0x28] sm:$0xff] }
  0x55   :  { %454 = vmatpush.msrb.mxu0 %v238_v29  ;;  %505 = vmatpush.msrb.mxu3 %v352_v44  ;;  %v537_v29 = vld [vmem:[#allocation9 + $0x60] sm:$0xff]  ;;  %v550_v43 = vld [vmem:[#allocation9 + $0xc8] sm:$0xff] }
  0x56   :  { %474 = vmatpush.msrb.mxu1 %v270_v46  ;;  %490 = vmatpush.msrb.mxu2 %v310_v47  ;;  %v529_v44 = vld [vmem:[#allocation9 + $0x20] sm:$0xff]  ;;  %v528_v46 = vld [vmem:[#allocation9 + $0x18] sm:$0xff] }
  0x57   :  { %455 = vmatpush.msrb.mxu0 %v236_v33  ;;  %506 = vmatpush.msrb.mxu3 %v350_v48  ;;  %v535_v33 = vld [vmem:[#allocation9 + $0x50] sm:$0xff]  ;;  %v548_v47 = vld [vmem:[#allocation9 + $0xb8] sm:$0xff] }
  0x58   :  { %475 = vmatpush.msrb.mxu1 %v268_v49  ;;  %491 = vmatpush.msrb.mxu2 %v308_v50  ;;  %v527_v48 = vld [vmem:[#allocation9 + $0x10] sm:$0xff]  ;;  %v526_v50 = vld [vmem:[#allocation9 + $0x8] sm:$0xff] }
  0x59   :  { %456 = vmatpush.msrb.mxu0 %v234_v37  ;;  %507 = vmatpush.msrb.mxu3 %v348_v51  ;;  %v553_v37 = vld [vmem:[#allocation9 + $0xe0] sm:$0xff]  ;;  %v547_v49 = vld [vmem:[#allocation9 + $0xb0] sm:$0xff]  ;;  %v546_v51 = vld [vmem:[#allocation9 + $0xa8] sm:$0xff] }
  0x5a   :  { %476 = vmatpush.msrb.mxu1 %v266_v52  ;;  %492 = vmatpush.msrb.mxu2 %v306_v53  ;;  %v525_v52 = vld [vmem:[#allocation9] sm:$0xff] }
  0x5b   :  { %457 = vmatpush.msrb.mxu0 %v232_v41  ;;  %508 = vmatpush.msrb.mxu3 %v346_v54  ;;  %v551_v41 = vld [vmem:[#allocation9 + $0xd0] sm:$0xff]  ;;  %v545_v53 = vld [vmem:[#allocation9 + $0xa0] sm:$0xff]  ;;  %v544_v54 = vld [vmem:[#allocation9 + $0x98] sm:$0xff] }
  0x5c   :  { %477 = vmatpush.msrb.mxu1 %v264_v55  ;;  %493 = vmatpush.msrb.mxu2 %v304_v56  ;;  %v543_v55 = vld [vmem:[#allocation9 + $0x90] sm:$0xff]  ;;  %v542_v56 = vld [vmem:[#allocation9 + $0x88] sm:$0xff] }
  0x5d   :  { %458 = vmatpush.msrb.mxu0 %v230_v45  ;;  %509 = vmatpush.msrb.mxu3 %v344_v57  ;;  %v549_v45 = vld [vmem:[#allocation9 + $0xc0] sm:$0xff] }
  0x5e   :  { %478 = vmatpush.msrb.mxu1 %v262_v58  ;;  %494 = vmatpush.msrb.mxu2 %v302_v59  ;;  %v541_v57 = vld [vmem:[#allocation9 + $0x80] sm:$0xff]  ;;  %v617_v58 = vld [vmem:[#allocation10 + $0x78] sm:$0xff]  ;;  %v616_v59 = vld [vmem:[#allocation10 + $0x70] sm:$0xff] }
  0x5f   :  { %510 = vmatpush.msrb.mxu3 %v342_v60  ;;  %v615_v60 = vld [vmem:[#allocation10 + $0x68] sm:$0xff] }
  0x60   :  { %495 = vmatpush.msrb.mxu2 %v300_v61  ;;  %v614_v61 = vld [vmem:[#allocation10 + $0x60] sm:$0xff] }
  0x61   :  { %511 = vmatpush.msrb.mxu3 %v340_v62  ;;  %v613_v62 = vld [vmem:[#allocation10 + $0x58] sm:$0xff] }
  0x62   :  { %496 = vmatpush.msrb.mxu2 %v298_v63  ;;  %v357_v63 = vld [vmem:[%s927_s4] sm:$0x3] }
  0x63   :  { %512 = vmatpush.msrb.mxu3 %v338_v0  ;;  %v612_v0 = vld [vmem:[#allocation10 + $0x50] sm:$0xff] }
  0x64   :  { %497 = vmatpush.msrb.mxu2 %v296_v1 }
  0x65   :  { %513 = vmatpush.msrb.mxu3 %v336_v2  ;;  %v359_v2 = vperm.slane %v357_v63, 0 }
  0x66   :  { %498 = vmatpush.msrb.mxu2 %v294_v4 }
  0x67   :  { %514 = vmatpush.msrb.mxu3 %v334_v5  ;;  %v610_v5 = vld [vmem:[#allocation10 + $0x40] sm:$0xff] }
  0x69   :  { %515 = vmatpush.msrb.mxu3 %v332_v7 }
  0x6b   :  { %516 = vmatpush.msrb.mxu3 %v330_v8  ;;  %v609_v8 = vld [vmem:[#allocation10 + $0x38] sm:$0xff] }
  0x6d   :  { %517 = vmatpush.msrb.mxu3 %v328_v10  ;;  %v360_v10 = vperm.slane %v357_v63, 1 }
  0x6f   :  { %518 = vmatpush.msrb.mxu3 %v326_v12 }
  0xa3   :  { %v162_v9 = vpop.f32.mrf.mxu3 }
  0xa4   :  { %v163_v11 = vadd.f32 %v162_v9, %v133_v6 }
  0xa6   :  { %v225_v13 = vmax.f32 %v163_v11, 0.0 }
  0xa8   :  { %379 = vmatmul.f32.vlgmr.msra.gmra.mxu0 %v225_v13 }
  0xa9   :  { %561 = vmatpush.msra.mxu0 %v540_v26  ;;  %v606_v26 = vld [vmem:[#allocation10 + $0x20] sm:$0xff] }
  0xab   :  { %v182_v15 = vpop.f32.mrf.mxu3  ;;  %562 = vmatpush.msra.mxu0 %v539_v27  ;;  %v605_v27 = vld [vmem:[#allocation10 + $0x18] sm:$0xff] }
  0xac   :  { %v183_v16 = vadd.f32 %v182_v15, %v134_v14 }
  0xad   :  { %563 = vmatpush.msra.mxu0 %v538_v28  ;;  %v604_v28 = vld [vmem:[#allocation10 + $0x10] sm:$0xff] }
  0xae   :  { %v226_v17 = vmax.f32 %v183_v16, 0.0 }
  0xaf   :  { %564 = vmatpush.msra.mxu0 %v537_v29  ;;  %v603_v29 = vld [vmem:[#allocation10 + $0x8] sm:$0xff] }
  0xb0   :  { %399 = vmatmul.f32.vlgmr.msra.gmra.mxu1 %v226_v17  ;;  %459 = vmatmul.f32.vlgmr.msrb.gmra.mxu0 %v225_v13 }
  0xb1   :  { %581 = vmatpush.msra.mxu1 %v556_v31  ;;  %565 = vmatpush.msra.mxu0 %v536_v30  ;;  %v602_v30 = vld [vmem:[#allocation10] sm:$0xff]  ;;  %v667_v31 = vld [vmem:[%s929_s6] ss:$0 sm:$0xff] }
  0xb3   :  { %v202_v19 = vpop.f32.mrf.mxu3  ;;  %582 = vmatpush.msra.mxu1 %v555_v32  ;;  %566 = vmatpush.msra.mxu0 %v535_v33 }
  0xb4   :  { %v203_v20 = vadd.f32 %v202_v19, %v135_v18 }
  0xb5   :  { %567 = vmatpush.msra.mxu0 %v534_v34  ;;  %583 = vmatpush.msra.mxu1 %v554_v35 }
  0xb6   :  { %v227_v21 = vmax.f32 %v203_v20, 0.0 }
  0xb7   :  { %568 = vmatpush.msra.mxu0 %v533_v36  ;;  %584 = vmatpush.msra.mxu1 %v553_v37  ;;  %v668_v37 = vld [vmem:[%s931_s8] ss:$0 sm:$0xff] }
  0xb8   :  { %419 = vmatmul.f32.vlgmr.msra.gmra.mxu2 %v227_v21  ;;  %479 = vmatmul.f32.vlgmr.msrb.gmra.mxu1 %v226_v17 }
  0xb9   :  { %569 = vmatpush.msra.mxu0 %v532_v38  ;;  %585 = vmatpush.msra.mxu1 %v552_v39 }
  0xba   :  { %622 = vmatpush.msra.mxu2 %v617_v58 }
  0xbb   :  { %v222_v23 = vpop.f32.mrf.mxu3  ;;  %570 = vmatpush.msra.mxu0 %v531_v40  ;;  %586 = vmatpush.msra.mxu1 %v551_v41 }
  0xbc   :  { %v223_v24 = vadd.f32 %v222_v23, %v136_v22  ;;  %623 = vmatpush.msra.mxu2 %v616_v59 }
  0xbd   :  { %571 = vmatpush.msra.mxu0 %v530_v42  ;;  %587 = vmatpush.msra.mxu1 %v550_v43 }
  0xbe   :  { %v228_v25 = vmax.f32 %v223_v24, 0.0  ;;  %624 = vmatpush.msra.mxu2 %v615_v60  ;;  %v608_v24 = vld [vmem:[#allocation10 + $0x30] sm:$0xff] }
  0xbf   :  { %572 = vmatpush.msra.mxu0 %v529_v44  ;;  %588 = vmatpush.msra.mxu1 %v549_v45 }
  0xc0   :  { %439 = vmatmul.f32.vlgmr.msra.gmra.mxu3 %v228_v25  ;;  %499 = vmatmul.f32.vlgmr.msrb.gmra.mxu2 %v227_v21 }
  0xc1   :  { %573 = vmatpush.msra.mxu0 %v528_v46  ;;  %589 = vmatpush.msra.mxu1 %v548_v47 }
  0xc2   :  { %625 = vmatpush.msra.mxu2 %v614_v61 }
  0xc3   :  { %574 = vmatpush.msra.mxu0 %v527_v48  ;;  %590 = vmatpush.msra.mxu1 %v547_v49 }
  0xc4   :  { %626 = vmatpush.msra.mxu2 %v613_v62 }
  0xc5   :  { %575 = vmatpush.msra.mxu0 %v526_v50  ;;  %591 = vmatpush.msra.mxu1 %v546_v51 }
  0xc6   :  { %627 = vmatpush.msra.mxu2 %v612_v0 }
  0xc7   :  { %576 = vmatpush.msra.mxu0 %v525_v52  ;;  %592 = vmatpush.msra.mxu1 %v545_v53 }
  0xc8   :  { %519 = vmatmul.f32.vlgmr.msrb.gmra.mxu3 %v228_v25  ;;  %628 = vmatpush.msra.mxu2 %v611_v3  ;;  %v607_v25 = vld [vmem:[#allocation10 + $0x28] sm:$0xff] }
  0xc9   :  { %593 = vmatpush.msra.mxu1 %v544_v54 }
  0xca   :  { %629 = vmatpush.msra.mxu2 %v610_v5 }
  0xcb   :  { %594 = vmatpush.msra.mxu1 %v543_v55 }
  0xcc   :  { %630 = vmatpush.msra.mxu2 %v609_v8 }
  0xcd   :  { %595 = vmatpush.msra.mxu1 %v542_v56 }
  0xce   :  { %631 = vmatpush.msra.mxu2 %v608_v24 }
  0xcf   :  { %596 = vmatpush.msra.mxu1 %v541_v57 }
  0xd0   :  { %632 = vmatpush.msra.mxu2 %v607_v25 }
  0xd2   :  { %633 = vmatpush.msra.mxu2 %v606_v26 }
  0xd4   :  { %634 = vmatpush.msra.mxu2 %v605_v27 }
  0xd6   :  { %635 = vmatpush.msra.mxu2 %v604_v28 }
  0xd8   :  { %636 = vmatpush.msra.mxu2 %v603_v29 }
  0xda   :  { %637 = vmatpush.msra.mxu2 %v602_v30 }
 0x125   :  { %v380_v1 = vpop.f32.mrf.mxu0 }
 0x126   :  { %v381_v7 = vadd.f32 %v380_v1, %v359_v2 }
 0x12d   :  { %v400_v4 = vpop.f32.mrf.mxu1  ;;  %v460_v12 = vpop.f32.mrf.mxu0 }
 0x12e   :  { %v401_v9 = vadd.f32 %v400_v4, %v381_v7  ;;  %v461_v16 = vadd.f32 %v460_v12, %v360_v10 }
 0x135   :  { %v480_v15 = vpop.f32.mrf.mxu1 }
 0x136   :  { %v481_v19 = vadd.f32 %v480_v15, %v461_v16 }
 0x13b   :  { %v420_v6 = vpop.f32.mrf.mxu2 }
 0x13c   :  { %v421_v11 = vadd.f32 %v420_v6, %v401_v9 }
 0x143   :  { %v440_v13 = vpop.f32.mrf.mxu3  ;;  %v500_v18 = vpop.f32.mrf.mxu2 }
 0x144   :  { %v441_v14 = vadd.f32 %v440_v13, %v421_v11  ;;  %v501_v20 = vadd.f32 %v500_v18, %v481_v19 }
 0x146   :  { %v523_v17 = vmax.f32 %v441_v14, 0.0 }
 0x148   :  { %577 = vmatmul.f32.vlgmr.msra.gmra.mxu0 %v523_v17 }
 0x14b   :  { %v520_v21 = vpop.f32.mrf.mxu3 }
 0x14c   :  { %v521_v22 = vadd.f32 %v520_v21, %v501_v20 }
 0x14e   :  { %v524_v23 = vmax.f32 %v521_v22, 0.0 }
 0x150   :  { %597 = vmatmul.f32.vlgmr.msra.gmra.mxu1 %v524_v23 }
 0x1c5   :  { %v578_v32 = vpop.f32.mrf.mxu0 }
 0x1c6   :  { %v579_v33 = vadd.f32 %v667_v31, %v578_v32 }
 0x1cd   :  { %v598_v34 = vpop.f32.mrf.mxu1 }
 0x1ce   :  { %v599_v35 = vadd.f32 %v598_v34, %v579_v33 }
 0x1d0   :  { %v601_v36 = vmax.f32 %v599_v35, 0.0 }
 0x1d2   :  { %638 = vmatmul.f32.vlgmr.msra.gmra.mxu2 %v601_v36 }
 0x255   :  { %v639_v38 = vpop.f32.mrf.mxu2 }
 0x256   :  { %v640_v39 = vadd.f32 %v668_v37, %v639_v38 }
 0x258   :  { %642 = vst [vmem:[%s932_s9] sm:$0xff] %v640_v39 }
 0x259   :  { %647 = vsyncpa [#allocation3], 1 }
 0x25a   :  { %648 = vsyncpa [#allocation5], 1 }
 0x25b   :  { %649 = vsyncpa [#allocation8], 1 }
 0x25c   :  { %650 = vsyncpa [#allocation11], 1 }

</bundles_post_ra>
